<compile_context>
chip_gen: v6e
topology: v6e:2x2x1
jax: 0.10.0
libtpu: 0.0.40
codegen_flags: <defaults>
</compile_context>

<pallas_src>
import functools

import jax
import jax.numpy as jnp
from jax import lax
from jax.experimental import pallas as pl
from jax.experimental.pallas import tpu as pltpu


def _round_up(x, m):
    return ((x + m - 1) // m) * m


def _pad2(x, rows, cols):
    r, c = x.shape
    if r == rows and c == cols:
        return x
    return jnp.pad(x, ((0, rows - r), (0, cols - c)))


def _vmem_capacity_bytes():
    try:
        return int(pltpu.get_tpu_info().vmem_capacity_bytes)
    except Exception:
        return 64 << 20  # conservative (v7x per-core physical VMEM)


def _memory_kernel(query_ref, entry_ref, wm_ref, wo_ref, bias_ref, out_ref,
                   qm_sc, m_sc, l_sc, acc_sc):
    k = pl.program_id(1)

    @pl.when(k == 0)
    def _init():
        # qm = query @ Wm (contract M/hidden dim): tiny (TB, E) matmul, once per
        # batch tile, f32 accumulate, stored bf16 so the K-scaled scores matmul
        # feeds the MXU with bf16 operands.
        qm = lax.dot_general(query_ref[...], wm_ref[...],
                             (((1,), (0,)), ((), ())),
                             preferred_element_type=jnp.float32)
        qm_sc[...] = qm.astype(qm_sc.dtype)
        m_sc[...] = jnp.full_like(m_sc, -jnp.inf)
        l_sc[...] = jnp.zeros_like(l_sc)
        acc_sc[...] = jnp.zeros_like(acc_sc)

    # scores_k = qm @ entry_k.T : contract E of both operands (canonical flash
    # q @ k^T form; no explicit transpose of the entry tile in-kernel).
    # TODO(synk): confirm via pl.lower_as_mlir that neither entry contraction
    # forces an XLU transpose of the (K_TILE, E_pad) tile per grid step.
    s = lax.dot_general(qm_sc[...], entry_ref[...],
                        (((1,), (1,)), ((), ())),
                        preferred_element_type=jnp.float32)
    # Additive mask row: 0 for real knowledge columns, -1e30 for K padding.
    s = s + bias_ref[...]

    # Online-softmax statistics, kept in f32.
    m_prev = m_sc[...]
    m_new = jnp.maximum(m_prev, jnp.max(s, axis=1, keepdims=True))
    alpha = jnp.exp(m_prev - m_new)                       # (TB, 1)
    p = jnp.exp(s - m_new)                                # (TB, K_TILE) f32
    l_sc[...] = alpha * l_sc[...] + jnp.sum(p, axis=1, keepdims=True)
    acc_sc[...] = alpha * acc_sc[...] + jnp.dot(
        p.astype(entry_ref.dtype), entry_ref[...],
        preferred_element_type=jnp.float32)               # (TB, E_pad) f32
    m_sc[...] = m_new

    @pl.when(k == pl.num_programs(1) - 1)
    def _finalize():
        # out = (acc @ Wo.T) / l : small per-batch-tile matmul, exact normalize.
        out = lax.dot_general(acc_sc[...].astype(wo_ref.dtype), wo_ref[...],
                              (((1,), (1,)), ((), ())),
                              preferred_element_type=jnp.float32)
        out_ref[...] = (out * (1.0 / l_sc[...])).astype(out_ref.dtype)


def prepare_memory(entry, wm, wo, *, vmem_cap=None):
    """One-time parameter preparation (pad + bf16 cast), outside the hot path.

    entry: (K, E) knowledge entries.
    wm:    (M, E) memory_embedding weight (PyTorch Linear layout (out, in)).
    wo:    (O, E) output_embedding weight.
    """
    K, E = entry.shape
    M, E_wm = wm.shape
    O, E_wo = wo.shape
    assert E == E_wm == E_wo, "entry_size mismatch between entry / Wm / Wo"
    if vmem_cap is None:
        vmem_cap = _vmem_capacity_bytes()

    E_pad = _round_up(E, 128)
    M_pad = _round_up(M, 128)
    O_pad = _round_up(O, 128)

    # Knowledge tile: largest multiple of 128 such that the double-buffered
    # bf16 entry tile uses at most ~1/8 of VMEM (capped at 2048).
    kt_cap = max(128, (((vmem_cap // 8) // (2 * 2 * E_pad)) // 128) * 128)
    K_TILE = min(_round_up(K, 128), kt_cap, 2048)
    K_pad = _round_up(K, K_TILE)

    entry_p = _pad2(entry, K_pad, E_pad).astype(jnp.bfloat16)
    wm_p = _pad2(wm, M_pad, E_pad).astype(jnp.bfloat16)
    wo_p = _pad2(wo, O_pad, E_pad).astype(jnp.bfloat16)

    # Additive softmax mask row for padded knowledge columns.
    col = jnp.arange(K_pad)[None, :]
    bias = jnp.where(col < K, 0.0, -1e30).astype(jnp.float32)

    return dict(entry=entry_p, wm=wm_p, wo=wo_p, bias=bias,
                K=K, E=E, M=M, O=O,
                K_pad=K_pad, E_pad=E_pad, M_pad=M_pad, O_pad=O_pad,
                K_TILE=K_TILE, vmem_cap=int(vmem_cap))


def memory_forward(params, query):
    """query: (B, M) -> knowledge (B, O) float32."""
    B, H = query.shape
    assert H == params["M"], "hidden_size must equal memory_size"

    M_pad, E_pad, O_pad = params["M_pad"], params["E_pad"], params["O_pad"]
    K_pad, K_TILE = params["K_pad"], params["K_TILE"]

    # Batch tile: 256 keeps the 256-wide MXU (v6e/v7x) full for large batches;
    # 128 otherwise / on v5e. bf16 query => sublane multiple of 16.
    kind = jax.devices()[0].device_kind.lower()
    mxu256 = not any(v in kind for v in ("v2", "v3", "v4", "v5"))
    if B >= 256 and mxu256:
        TB = 256
    elif B > 128:
        TB = 128
    else:
        TB = _round_up(B, 16)
    B_pad = _round_up(B, TB)

    query_p = _pad2(query, B_pad, M_pad).astype(jnp.bfloat16)

    # Explicit scoped-VMEM budget (default 16/32 MiB is too small at real K).
    est = (2 * K_TILE * E_pad * 2          # entry, double-buffered bf16
           + 2 * TB * M_pad * 2            # query tiles bf16
           + (M_pad + O_pad) * E_pad * 2   # Wm + Wo, single-buffered bf16
           + 2 * TB * O_pad * 4            # output tiles f32
           + TB * E_pad * (2 + 4)          # qm (bf16) + acc (f32) scratch
           + 4 * TB * K_TILE * 4           # in-flight s / p temporaries
           + 2 * 8 * K_TILE * 4)           # mask row
    vmem_limit = min(max(2 * est + (2 << 20), 32 << 20),
                     params["vmem_cap"] * 3 // 4)

    grid = (B_pad // TB, K_pad // K_TILE)

    out_padded = pl.pallas_call(
        _memory_kernel,
        out_shape=jax.ShapeDtypeStruct((B_pad, O_pad), jnp.float32),
        grid=grid,
        in_specs=[
            pl.BlockSpec((TB, M_pad), lambda i, k: (i, 0)),         # query tile
            pl.BlockSpec((K_TILE, E_pad), lambda i, k: (k, 0)),     # entry, streamed over K
            pl.BlockSpec((M_pad, E_pad), lambda i, k: (0, 0),
                         pipeline_mode=pl.Buffered(1)),             # Wm (grid-invariant)
            pl.BlockSpec((O_pad, E_pad), lambda i, k: (0, 0),
                         pipeline_mode=pl.Buffered(1)),             # Wo (grid-invariant)
            pl.BlockSpec((1, K_TILE), lambda i, k: (0, k)),         # softmax mask row
        ],
        out_specs=pl.BlockSpec((TB, O_pad), lambda i, k: (i, 0)),
        scratch_shapes=[
            pltpu.VMEM((TB, E_pad), jnp.bfloat16),   # qm = query @ Wm
            pltpu.VMEM((TB, 1), jnp.float32),        # running max m
            pltpu.VMEM((TB, 1), jnp.float32),        # running denom l
            pltpu.VMEM((TB, E_pad), jnp.float32),    # acc = unnormalized prob @ entry
        ],
        compiler_params=pltpu.CompilerParams(
            dimension_semantics=("parallel", "arbitrary"),
            vmem_limit_bytes=int(vmem_limit),
        ),
    )(query_p, params["entry"], params["wm"], params["wo"], params["bias"])

    return out_padded[:B, :params["O"]]


def reference_forward(entry, query, wm, wo):
    memory = entry @ wm.T
    output = entry @ wo.T
    scores = query @ memory.T
    prob = jax.nn.softmax(scores, axis=1)
    return prob @ output


if __name__ == "__main__":
    # Small shapes consistent with the Memory module.
    knowledge_size = 16   # K: number of knowledge entries
    entry_size = 32       # E
    memory_size = 32      # M (== hidden_size of the query)
    output_size = 32      # O
    batch_size = 8        # B

    key = jax.random.PRNGKey(0)
    k_entry, k_query, k_wm, k_wo = jax.random.split(key, 4)

    entry = jax.random.normal(k_entry, (knowledge_size, entry_size), dtype=jnp.float32)
    query = jax.random.normal(k_query, (batch_size, memory_size), dtype=jnp.float32)

    # Deterministic init mimicking nn.Linear(bias=False): uniform +-1/sqrt(fan_in).
    bound = 1.0 / (entry_size ** 0.5)
    wm = jax.random.uniform(k_wm, (memory_size, entry_size), minval=-bound,
                            maxval=bound, dtype=jnp.float32)
    wo = jax.random.uniform(k_wo, (output_size, entry_size), minval=-bound,
                            maxval=bound, dtype=jnp.float32)

    params = prepare_memory(entry, wm, wo)       # one-time pad/cast (outside hot path)
    out = memory_forward(params, query)
    out = jax.block_until_ready(out)
    assert out.shape == (batch_size, output_size)

    # Reference using the same bf16 input quantization the kernel applies, so
    # the check isolates kernel correctness from the deliberate bf16 cast.
    q16 = lambda x: x.astype(jnp.bfloat16).astype(jnp.float32)
    ref = reference_forward(q16(entry), q16(query), q16(wm), q16(wo))
    max_err = float(jnp.max(jnp.abs(out - ref)))
    assert jnp.allclose(out, ref, atol=2e-2, rtol=2e-2), max_err

    print("KERNEL_OK")
</pallas_src>

<mosaic_0001>
module attributes {stable_mosaic.version = 11 : i64} {
  func.func @_memory_kernel(%arg0: i32, %arg1: i32, %arg2: memref<16x128xbf16, #tpu.memory_space<vmem>>, %arg3: memref<128x128xbf16, #tpu.memory_space<vmem>>, %arg4: memref<128x128xbf16, #tpu.memory_space<vmem>>, %arg5: memref<128x128xbf16, #tpu.memory_space<vmem>>, %arg6: memref<1x128xf32, #tpu.memory_space<vmem>>, %arg7: memref<16x128xf32, #tpu.memory_space<vmem>>, %arg8: memref<16x128xbf16, #tpu.memory_space<vmem>>, %arg9: memref<16x1xf32, #tpu.memory_space<vmem>>, %arg10: memref<16x1xf32, #tpu.memory_space<vmem>>, %arg11: memref<16x128xf32, #tpu.memory_space<vmem>>) attributes {dimension_semantics = [#tpu.dimension_semantics<parallel>, #tpu.dimension_semantics<arbitrary>], iteration_bounds = array<i64: 1, 1>, scalar_prefetch = 0 : i64, scratch_operands = 4 : i64, tpu.core_type = #tpu.core_type<tc>, window_params = [{transform_indices = @transform_0, window_bounds = array<i64: 16, 128>}, {transform_indices = @transform_1, window_bounds = array<i64: 128, 128>}, {pipeline_mode = #tpu.pipeline_mode<synchronous>, transform_indices = @transform_2, window_bounds = array<i64: 128, 128>}, {pipeline_mode = #tpu.pipeline_mode<synchronous>, transform_indices = @transform_3, window_bounds = array<i64: 128, 128>}, {transform_indices = @transform_4, window_bounds = array<i64: 1, 128>}, {transform_indices = @transform_5, window_bounds = array<i64: 16, 128>}]} {
    %c0_i32 = arith.constant 0 : i32
    %0 = arith.cmpi eq, %arg1, %c0_i32 : i32
    %1 = arith.extui %0 : i1 to i32
    %c0_i32_0 = arith.constant 0 : i32
    %2 = arith.cmpi ne, %1, %c0_i32_0 : i32
    scf.if %2 {
      %c0_25 = arith.constant 0 : index
      %c0_26 = arith.constant 0 : index
      %36 = vector.load %arg2[%c0_25, %c0_26] : memref<16x128xbf16, #tpu.memory_space<vmem>>, vector<16x128xbf16>
      %c0_27 = arith.constant 0 : index
      %c0_28 = arith.constant 0 : index
      %37 = vector.load %arg4[%c0_27, %c0_28] : memref<128x128xbf16, #tpu.memory_space<vmem>>, vector<128x128xbf16>
      %cst_29 = arith.constant dense<0.000000e+00> : vector<16x128xf32>
      %38 = tpu.matmul %36, %37, %cst_29 {dimension_numbers = #tpu.dot_dimension_numbers<[1], [0], [0], [1], [0, 0, 1, 1], [], []>} : vector<16x128xbf16>, vector<128x128xbf16>, vector<16x128xf32> -> vector<16x128xf32>
      %39 = arith.truncf %38 : vector<16x128xf32> to vector<16x128xbf16>
      %c0_30 = arith.constant 0 : index
      %c0_31 = arith.constant 0 : index
      %40 = vector.load %arg8[%c0_30, %c0_31] : memref<16x128xbf16, #tpu.memory_space<vmem>>, vector<16x128xbf16>
      tpu.vector_store %arg8[%c0_30, %c0_31], %39 {strides = array<i32>} : memref<16x128xbf16, #tpu.memory_space<vmem>>, vector<16x128xbf16>,
      %cst_32 = arith.constant 0xFF800000 : f32
      %41 = vector.broadcast %cst_32 : f32 to vector<16x1xf32>
      %c0_33 = arith.constant 0 : index
      %c0_34 = arith.constant 0 : index
      %42 = vector.load %arg9[%c0_33, %c0_34] : memref<16x1xf32, #tpu.memory_space<vmem>>, vector<16x1xf32>
      tpu.vector_store %arg9[%c0_33, %c0_34], %41 {strides = array<i32>} : memref<16x1xf32, #tpu.memory_space<vmem>>, vector<16x1xf32>,
      %cst_35 = arith.constant 0.000000e+00 : f32
      %43 = vector.broadcast %cst_35 : f32 to vector<16x1xf32>
      %c0_36 = arith.constant 0 : index
      %c0_37 = arith.constant 0 : index
      %44 = vector.load %arg10[%c0_36, %c0_37] : memref<16x1xf32, #tpu.memory_space<vmem>>, vector<16x1xf32>
      tpu.vector_store %arg10[%c0_36, %c0_37], %43 {strides = array<i32>} : memref<16x1xf32, #tpu.memory_space<vmem>>, vector<16x1xf32>,
      %cst_38 = arith.constant 0.000000e+00 : f32
      %45 = vector.broadcast %cst_38 : f32 to vector<16x128xf32>
      %c0_39 = arith.constant 0 : index
      %c0_40 = arith.constant 0 : index
      %46 = vector.load %arg11[%c0_39, %c0_40] : memref<16x128xf32, #tpu.memory_space<vmem>>, vector<16x128xf32>
      tpu.vector_store %arg11[%c0_39, %c0_40], %45 {strides = array<i32>} : memref<16x128xf32, #tpu.memory_space<vmem>>, vector<16x128xf32>,
    } else {
    }
    %c0 = arith.constant 0 : index
    %c0_1 = arith.constant 0 : index
    %3 = vector.load %arg8[%c0, %c0_1] : memref<16x128xbf16, #tpu.memory_space<vmem>>, vector<16x128xbf16>
    %c0_2 = arith.constant 0 : index
    %c0_3 = arith.constant 0 : index
    %4 = vector.load %arg3[%c0_2, %c0_3] : memref<128x128xbf16, #tpu.memory_space<vmem>>, vector<128x128xbf16>
    %cst = arith.constant dense<0.000000e+00> : vector<16x128xf32>
    %5 = tpu.matmul %3, %4, %cst {dimension_numbers = #tpu.dot_dimension_numbers<[1], [1], [0], [0], [0, 0, 1, 0], [], []>} : vector<16x128xbf16>, vector<128x128xbf16>, vector<16x128xf32> -> vector<16x128xf32>
    %c0_4 = arith.constant 0 : index
    %c0_5 = arith.constant 0 : index
    %6 = vector.load %arg6[%c0_4, %c0_5] : memref<1x128xf32, #tpu.memory_space<vmem>>, vector<1x128xf32>
    %7 = vector.broadcast %6 : vector<1x128xf32> to vector<16x128xf32>
    %8 = arith.addf %5, %7 : vector<16x128xf32>
    %c0_6 = arith.constant 0 : index
    %c0_7 = arith.constant 0 : index
    %9 = vector.load %arg9[%c0_6, %c0_7] : memref<16x1xf32, #tpu.memory_space<vmem>>, vector<16x1xf32>
    %cst_8 = arith.constant dense<0xFF800000> : vector<16xf32>
    %10 = vector.multi_reduction <maximumf>, %8, %cst_8 [1] : vector<16x128xf32> to vector<16xf32>
    %11 = vector.shape_cast %10 : vector<16xf32> to vector<16x1xf32>
    %12 = arith.maximumf %9, %11 : vector<16x1xf32>
    %13 = arith.subf %9, %12 : vector<16x1xf32>
    %14 = math.exp %13 : vector<16x1xf32>
    %15 = vector.broadcast %12 : vector<16x1xf32> to vector<16x128xf32>
    %16 = arith.subf %8, %15 : vector<16x128xf32>
    %17 = math.exp %16 : vector<16x128xf32>
    %c0_9 = arith.constant 0 : index
    %c0_10 = arith.constant 0 : index
    %18 = vector.load %arg10[%c0_9, %c0_10] : memref<16x1xf32, #tpu.memory_space<vmem>>, vector<16x1xf32>
    %19 = arith.mulf %14, %18 : vector<16x1xf32>
    %cst_11 = arith.constant dense<0.000000e+00> : vector<16xf32>
    %20 = vector.multi_reduction <add>, %17, %cst_11 [1] : vector<16x128xf32> to vector<16xf32>
    %21 = vector.shape_cast %20 : vector<16xf32> to vector<16x1xf32>
    %22 = arith.addf %19, %21 : vector<16x1xf32>
    %c0_12 = arith.constant 0 : index
    %c0_13 = arith.constant 0 : index
    %23 = vector.load %arg10[%c0_12, %c0_13] : memref<16x1xf32, #tpu.memory_space<vmem>>, vector<16x1xf32>
    tpu.vector_store %arg10[%c0_12, %c0_13], %22 {strides = array<i32>} : memref<16x1xf32, #tpu.memory_space<vmem>>, vector<16x1xf32>,
    %c0_14 = arith.constant 0 : index
    %c0_15 = arith.constant 0 : index
    %24 = vector.load %arg11[%c0_14, %c0_15] : memref<16x128xf32, #tpu.memory_space<vmem>>, vector<16x128xf32>
    %25 = vector.broadcast %14 : vector<16x1xf32> to vector<16x128xf32>
    %26 = arith.mulf %25, %24 : vector<16x128xf32>
    %27 = arith.truncf %17 : vector<16x128xf32> to vector<16x128xbf16>
    %c0_16 = arith.constant 0 : index
    %c0_17 = arith.constant 0 : index
    %28 = vector.load %arg3[%c0_16, %c0_17] : memref<128x128xbf16, #tpu.memory_space<vmem>>, vector<128x128xbf16>
    %cst_18 = arith.constant dense<0.000000e+00> : vector<16x128xf32>
    %29 = tpu.matmul %27, %28, %cst_18 {dimension_numbers = #tpu.dot_dimension_numbers<[1], [0], [0], [1], [0, 0, 1, 1], [], []>} : vector<16x128xbf16>, vector<128x128xbf16>, vector<16x128xf32> -> vector<16x128xf32>
    %30 = arith.addf %26, %29 : vector<16x128xf32>
    %c0_19 = arith.constant 0 : index
    %c0_20 = arith.constant 0 : index
    %31 = vector.load %arg11[%c0_19, %c0_20] : memref<16x128xf32, #tpu.memory_space<vmem>>, vector<16x128xf32>
    tpu.vector_store %arg11[%c0_19, %c0_20], %30 {strides = array<i32>} : memref<16x128xf32, #tpu.memory_space<vmem>>, vector<16x128xf32>,
    %c0_21 = arith.constant 0 : index
    %c0_22 = arith.constant 0 : index
    %32 = vector.load %arg9[%c0_21, %c0_22] : memref<16x1xf32, #tpu.memory_space<vmem>>, vector<16x1xf32>
    tpu.vector_store %arg9[%c0_21, %c0_22], %12 {strides = array<i32>} : memref<16x1xf32, #tpu.memory_space<vmem>>, vector<16x1xf32>,
    %c0_i32_23 = arith.constant 0 : i32
    %33 = arith.cmpi eq, %arg1, %c0_i32_23 : i32
    %34 = arith.extui %33 : i1 to i32
    %c0_i32_24 = arith.constant 0 : i32
    %35 = arith.cmpi ne, %34, %c0_i32_24 : i32
    scf.if %35 {
      %c0_25 = arith.constant 0 : index
      %c0_26 = arith.constant 0 : index
      %36 = vector.load %arg11[%c0_25, %c0_26] : memref<16x128xf32, #tpu.memory_space<vmem>>, vector<16x128xf32>
      %37 = arith.truncf %36 : vector<16x128xf32> to vector<16x128xbf16>
      %c0_27 = arith.constant 0 : index
      %c0_28 = arith.constant 0 : index
      %38 = vector.load %arg5[%c0_27, %c0_28] : memref<128x128xbf16, #tpu.memory_space<vmem>>, vector<128x128xbf16>
      %cst_29 = arith.constant dense<0.000000e+00> : vector<16x128xf32>
      %39 = tpu.matmul %37, %38, %cst_29 {dimension_numbers = #tpu.dot_dimension_numbers<[1], [1], [0], [0], [0, 0, 1, 0], [], []>} : vector<16x128xbf16>, vector<128x128xbf16>, vector<16x128xf32> -> vector<16x128xf32>
      %c0_30 = arith.constant 0 : index
      %c0_31 = arith.constant 0 : index
      %40 = vector.load %arg10[%c0_30, %c0_31] : memref<16x1xf32, #tpu.memory_space<vmem>>, vector<16x1xf32>
      %cst_32 = arith.constant 1.000000e+00 : f32
      %41 = vector.broadcast %cst_32 : f32 to vector<16x1xf32>
      %42 = arith.divf %41, %40 : vector<16x1xf32>
      %43 = vector.broadcast %42 : vector<16x1xf32> to vector<16x128xf32>
      %44 = arith.mulf %39, %43 : vector<16x128xf32>
      %c0_33 = arith.constant 0 : index
      %c0_34 = arith.constant 0 : index
      %45 = vector.load %arg7[%c0_33, %c0_34] : memref<16x128xf32, #tpu.memory_space<vmem>>, vector<16x128xf32>
      tpu.vector_store %arg7[%c0_33, %c0_34], %44 {strides = array<i32>} : memref<16x128xf32, #tpu.memory_space<vmem>>, vector<16x128xf32>,
    } else {
    }
    return
  }
  func.func @transform_0(%arg0: i32, %arg1: i32) -> (i32, i32) {
    %c0_i32 = arith.constant 0 : i32
    %c0_i32_0 = arith.constant 0 : i32
    return %arg0, %c0_i32 : i32, i32
  }
  func.func @transform_1(%arg0: i32, %arg1: i32) -> (i32, i32) {
    %c0_i32 = arith.constant 0 : i32
    %c0_i32_0 = arith.constant 0 : i32
    return %arg1, %c0_i32 : i32, i32
  }
  func.func @transform_2(%arg0: i32, %arg1: i32) -> (i32, i32) {
    %c0_i32 = arith.constant 0 : i32
    %c0_i32_0 = arith.constant 0 : i32
    %c0_i32_1 = arith.constant 0 : i32
    return %c0_i32, %c0_i32_0 : i32, i32
  }
  func.func @transform_3(%arg0: i32, %arg1: i32) -> (i32, i32) {
    %c0_i32 = arith.constant 0 : i32
    %c0_i32_0 = arith.constant 0 : i32
    %c0_i32_1 = arith.constant 0 : i32
    return %c0_i32, %c0_i32_0 : i32, i32
  }
  func.func @transform_4(%arg0: i32, %arg1: i32) -> (i32, i32) {
    %c0_i32 = arith.constant 0 : i32
    %c0_i32_0 = arith.constant 0 : i32
    return %c0_i32, %arg1 : i32, i32
  }
  func.func @transform_5(%arg0: i32, %arg1: i32) -> (i32, i32) {
    %c0_i32 = arith.constant 0 : i32
    %c0_i32_0 = arith.constant 0 : i32
    return %arg0, %c0_i32 : i32, i32
  }
}

</mosaic_0001>

<bundles_post_ra>
// kernel: tpu_custom_call.1
= control target key start
LH: loop header
LB: loop body
LE: loop exit
PB: predicated region body
PF: predicated region fallthrough
CT: control target
= control target key end

     0   :  { %10 = vsyncpa [#allocation7], 0  ;;  %s1102_s0 = inlined_call_operand.hbm [shape: bf16[16,128], index: 0, kind: input, shape index: {}]   ;;  %s1103_s1 = inlined_call_operand.hbm [shape: bf16[128,128], index: 1, kind: input, shape index: {}]   ;;  %s1104_s2 = inlined_call_operand.hbm [shape: bf16[128,128], index: 2, kind: input, shape index: {}]   ;;  %s1105_s3 = inlined_call_operand.hbm [shape: bf16[128,128], index: 3, kind: input, shape index: {}]   ;;  %s1106_s4 = inlined_call_operand.vmem [shape: f32[1,128], index: 4, kind: input, shape index: {}]   ;;  %s1107_s5 = inlined_call_operand.hbm [shape: f32[16,128], index: 5, kind: output, shape index: {}]  }
   0x1   :  { %11 = vsyncpa [#allocation10], 0 }
   0x2   :  { %12 = vsyncpa [#allocation13], 0 }
   0x3   :  { %13 = vsyncpa [#allocation8], 0  ;;  %s979_s18 = smov [#allocation9]   ;;  %s980_s20 = smov [#allocation6]  }
   0x4   :  { %s31_s19 = sshll.u32 %s979_s18, 4  ;;  %s19_s21 = sshll.u32 %s980_s20, 4  ;;  %s32_s19 = int_to_ptr.vmem [resolvable:$true] %s31_s19  ;;  %s20_s21 = int_to_ptr.vmem [resolvable:$true] %s19_s21 }
   0x5   :  { %s879_s22 = scalar_lea.vmem %s32_s19, 1024  ;;  %p884_p1 = scmp.lt.s32.totalorder %s32_s19, %s32_s19 }
   0x6   :  { %p880_p0 = scmp.ne.s32.totalorder %s32_s19, %s879_s22  ;;  %p885_p2 = scmp.lt.s32.totalorder %s879_s22, %s879_s22 }
   0x8   :  { %p886_p3 = por %p885_p2, %p884_p1 }
   0xa   :  { %p887_p4 = pnand %p886_p3, %p880_p0 }
   0xc   :  { %890 = shalt.err (!%p887_p4)
}
   0xd   :  { %s981_s23 = smov 64   ;;  %s982_s24 = smov 4  }
   0xe   :  { %37 = dma.hbm_to_vmem [thread:$0]  %s1103_s1, 1024, %s32_s19, [#allocation10], %s981_s23, %s981_s23, %s982_s24  }
   0xf   :  { %s899_s27 = scalar_lea.vmem %s20_s21, 128  ;;  %p904_p6 = scmp.lt.s32.totalorder %s20_s21, %s20_s21 }
  0x10   :  { %p900_p5 = scmp.ne.s32.totalorder %s20_s21, %s899_s27  ;;  %p905_p7 = scmp.lt.s32.totalorder %s899_s27, %s899_s27 }
  0x12   :  { %p906_p8 = por %p905_p7, %p904_p6 }
  0x14   :  { %p907_p9 = pnand %p906_p8, %p900_p5 }
  0x16   :  { %910 = shalt.err (!%p907_p9)
}
  0x17   :  { %25 = dma.hbm_to_vmem [thread:$0]  %s1102_s0, 128, %s20_s21, [#allocation7], %s981_s23, %s981_s23, %s982_s24  }
  0x18   :  { %s983_s30 = smov [#allocation11]   ;;  %s984_s7 = smov [#allocation12]  }
  0x19   :  { %s43_s6 = sshll.u32 %s983_s30, 4  ;;  %s55_s8 = sshll.u32 %s984_s7, 4  ;;  %s44_s6 = int_to_ptr.vmem [resolvable:$true] %s43_s6  ;;  %s56_s8 = int_to_ptr.vmem [resolvable:$true] %s55_s8 }
  0x1a   :  { %s919_s1 = scalar_lea.vmem %s44_s6, 1024  ;;  %p924_p11 = scmp.lt.s32.totalorder %s44_s6, %s44_s6 }
  0x1b   :  { %p920_p10 = scmp.ne.s32.totalorder %s44_s6, %s919_s1  ;;  %p925_p12 = scmp.lt.s32.totalorder %s919_s1, %s919_s1 }
  0x1d   :  { %p926_p13 = por %p925_p12, %p924_p11 }
  0x1f   :  { %p927_p0 = pnand %p926_p13, %p920_p10 }
  0x21   :  { %930 = shalt.err (!%p927_p0)
}
  0x22   :  { %49 = dma.hbm_to_vmem [thread:$0]  %s1104_s2, 1024, %s44_s6, [#allocation10], %s981_s23, %s981_s23, %s982_s24  }
  0x23   :  { %s939_s0 = scalar_lea.vmem %s56_s8, 1024  ;;  %p944_p2 = scmp.lt.s32.totalorder %s56_s8, %s56_s8 }
  0x24   :  { %p940_p1 = scmp.ne.s32.totalorder %s56_s8, %s939_s0  ;;  %p945_p3 = scmp.lt.s32.totalorder %s939_s0, %s939_s0 }
  0x26   :  { %p946_p4 = por %p945_p3, %p944_p2 }
  0x28   :  { %p947_p5 = pnand %p946_p4, %p940_p1 }
  0x2a   :  { %950 = shalt.err (!%p947_p5)
}
  0x2b   :  { %61 = dma.hbm_to_vmem [thread:$0]  %s1105_s3, 1024, %s56_s8, [#allocation13], %s981_s23, %s981_s23, %s982_s24  }
  0x2c   :  { %971 = dma.done.wait [#allocation7], 128  }
  0x2d   :  { %972 = vsyncadd [#allocation7], 4294967168 }
  0x2e   :  { %973 = dma.done.wait [#allocation10], 2048  }
  0x2f   :  { %974 = vsyncadd [#allocation10], 4294965248 }
  0x30   :  { %975 = dma.done.wait [#allocation13], 1024  }
  0x31   :  { %976 = vsyncadd [#allocation13], 4294966272  ;;  %v985_v0 = vmov 0.0   ;;  %vm986_vm0 = vmmov 0   ;;  %v825_v1 = vld [vmem:[#allocation11 + $0x38] sm:$0xff]   ;;  %v826_v2 = vld [vmem:[#allocation11 + $0x30] sm:$0xff]  }
  0x32   :  { %730 = vmatprep.subr.bf16.mxu1 %v985_v0  ;;  %746 = vmatprep.mubr.msk.bf16.mxu1 %vm986_vm0, %v985_v0  ;;  %v827_v3 = vld [vmem:[#allocation11 + $0x28] sm:$0xff]   ;;  %v828_v4 = vld [vmem:[#allocation11 + $0x20] sm:$0xff]   ;;  %v829_v5 = vld [vmem:[#allocation11 + $0x18] sm:$0xff]   ;;  %vm204_vm1 = vcmask 7168   ;;  %v987_v24 = vmov -inf   ;;  %v988_v32 = vmov 0  }
  0x33   :  { %770 = vmatprep.subr.bf16.mxu0 %v985_v0  ;;  %786 = vmatprep.mubr.msk.bf16.mxu0 %vm986_vm0, %v985_v0  ;;  %v830_v6 = vld [vmem:[#allocation11 + $0x10] sm:$0xff]   ;;  %v831_v7 = vld [vmem:[#allocation11 + $0x8] sm:$0xff]   ;;  %v832_v8 = vld [vmem:[#allocation11] sm:$0xff]   ;;  %205 = vst.msk [vmem:[#allocation3] sm:$0xff] %vm204_vm1, %v987_v24 }
  0x34   :  { %731 = vmatpush3.bf16.msra.mxu1 %v825_v1  ;;  %v833_v9 = vld [vmem:[#allocation6] sm:$0xff]   ;;  %v835_v11 = vld [vmem:[#allocation9 + $0x30] sm:$0xff]   ;;  %v836_v12 = vld [vmem:[#allocation9 + $0x28] sm:$0xff]   ;;  %206 = vst.msk [vmem:[#allocation3 + $0x8] sm:$0xff] %vm204_vm1, %v987_v24  ;;  %823 = vset.pattern.permute.xlu1 %v988_v32 }
  0x35   :  { %732 = vmatprep.subr.bf16.mxu1 %v985_v0  ;;  %v834_v10 = vld [vmem:[#allocation9 + $0x38] sm:$0xff]   ;;  %v837_v13 = vld [vmem:[#allocation9 + $0x20] sm:$0xff]   ;;  %v839_v15 = vld [vmem:[#allocation9 + $0x10] sm:$0xff]   ;;  %207 = vst.msk [vmem:[#allocation4] sm:$0xff] %vm204_vm1, %v985_v0  ;;  %824 = vset.pattern.permute.xlu0 %v988_v32 }
  0x36   :  { %v838_v14 = vld [vmem:[#allocation9 + $0x18] sm:$0xff]   ;;  %v840_v16 = vld [vmem:[#allocation9 + $0x8] sm:$0xff]   ;;  %v841_v17 = vld [vmem:[#allocation9] sm:$0xff]   ;;  %208 = vst.msk [vmem:[#allocation4 + $0x8] sm:$0xff] %vm204_vm1, %v985_v0 }
  0x37   :  { %v661_v25 = vld [vmem:[%s1106_s4] ss:$0 sm:$0xff]  ;;  %v843_v33 = vld [vmem:[#allocation9 + $0x38] sm:$0xff]   ;;  %v845_v36 = vld [vmem:[#allocation9 + $0x28] sm:$0xff]   ;;  %s989_s4 = smov [#allocation14]  }
  0x38   :  { %733 = vmatpush3.bf16.msra.mxu1 %v826_v2  ;;  %771 = vmatpush3.bf16.msra.mxu0 %v843_v33  ;;  %v844_v34 = vld [vmem:[#allocation9 + $0x30] sm:$0xff]   ;;  %v846_v40 = vld [vmem:[#allocation9 + $0x20] sm:$0xff]   ;;  %v847_v45 = vld [vmem:[#allocation9 + $0x18] sm:$0xff]   ;;  %s636_s13 = sshll.u32 %s989_s4, 4  ;;  %s637_s13 = int_to_ptr.vmem [resolvable:$true] %s636_s13 }
  0x39   :  { %734 = vmatprep.subr.bf16.mxu1 %v985_v0  ;;  %772 = vmatprep.subr.bf16.mxu0 %v985_v0  ;;  %v848_v47 = vld [vmem:[#allocation9 + $0x10] sm:$0xff]   ;;  %v849_v49 = vld [vmem:[#allocation9 + $0x8] sm:$0xff]   ;;  %v850_v50 = vld [vmem:[#allocation9] sm:$0xff]   ;;  %s951_s14 = scalar_lea.vmem %s637_s13, 256  ;;  %p956_p7 = scmp.lt.s32.totalorder %s637_s13, %s637_s13 }
  0x3a   :  { %v331_v35 = vld [vmem:[#allocation3] sm:$0xff]  ;;  %v852_v63 = vld [vmem:[#allocation12 + $0x30] sm:$0xff]   ;;  %v853_v1 = vld [vmem:[#allocation12 + $0x28] sm:$0xff]   ;;  %p952_p6 = scmp.ne.s32.totalorder %s637_s13, %s951_s14  ;;  %p957_p8 = scmp.lt.s32.totalorder %s951_s14, %s951_s14 }
  0x3b   :  { %v332_v39 = vld [vmem:[#allocation3 + $0x8] sm:$0xff]  ;;  %v851_v62 = vld [vmem:[#allocation12 + $0x38] sm:$0xff]  }
  0x3c   :  { %735 = vmatpush3.bf16.msra.mxu1 %v827_v3  ;;  %773 = vmatpush3.bf16.msra.mxu0 %v844_v34  ;;  %v854_v2 = vld [vmem:[#allocation12 + $0x20] sm:$0xff]   ;;  %v855_v3 = vld [vmem:[#allocation12 + $0x18] sm:$0xff]   ;;  %p958_p9 = por %p957_p8, %p956_p7 }
  0x3d   :  { %736 = vmatprep.subr.bf16.mxu1 %v985_v0  ;;  %774 = vmatprep.subr.bf16.mxu0 %v985_v0 }
  0x3e   :  { %p959_p10 = pnand %p958_p9, %p952_p6 }
  0x40   :  { %737 = vmatpush3.bf16.msra.mxu1 %v828_v4  ;;  %775 = vmatpush3.bf16.msra.mxu0 %v845_v36  ;;  %v856_v4 = vld [vmem:[#allocation12 + $0x10] sm:$0xff]  }
  0x41   :  { %738 = vmatprep.subr.bf16.mxu1 %v985_v0  ;;  %776 = vmatprep.subr.bf16.mxu0 %v985_v0 }
  0x44   :  { %739 = vmatpush3.bf16.msra.mxu1 %v829_v5  ;;  %777 = vmatpush3.bf16.msra.mxu0 %v846_v40  ;;  %v857_v5 = vld [vmem:[#allocation12 + $0x8] sm:$0xff]  }
  0x45   :  { %740 = vmatprep.subr.bf16.mxu1 %v985_v0  ;;  %778 = vmatprep.subr.bf16.mxu0 %v985_v0 }
  0x48   :  { %741 = vmatpush3.bf16.msra.mxu1 %v830_v6  ;;  %779 = vmatpush3.bf16.msra.mxu0 %v847_v45  ;;  %v858_v6 = vld [vmem:[#allocation12] sm:$0xff]  }
  0x49   :  { %742 = vmatprep.subr.bf16.mxu1 %v985_v0  ;;  %780 = vmatprep.subr.bf16.mxu0 %v985_v0 }
  0x4c   :  { %743 = vmatpush3.bf16.msra.mxu1 %v831_v7  ;;  %781 = vmatpush3.bf16.msra.mxu0 %v848_v47 }
  0x4d   :  { %744 = vmatprep.subr.bf16.mxu1 %v985_v0  ;;  %782 = vmatprep.subr.bf16.mxu0 %v985_v0 }
  0x50   :  { %745 = vmatpush3.bf16.msra.mxu1 %v832_v8  ;;  %783 = vmatpush3.bf16.msra.mxu0 %v849_v49  ;;  %v361_v8 = vld [vmem:[#allocation4] sm:$0xff] }
  0x51   :  { %750 = vmatprep.subr.bf16.mxu1 %v985_v0  ;;  %784 = vmatprep.subr.bf16.mxu0 %v985_v0 }
  0x53   :  { %747 = vmatmul.mubr.bf16.vlgmr.msra.gmra.mxu1 %v833_v9 }
  0x54   :  { %751 = vmatpush3.bf16.xpose.msra.mxu1 %v834_v10  ;;  %766 = vmatprep.mubr.msk.bf16.mxu1 %vm986_vm0, %v985_v0 }
  0x55   :  { %752 = vmatprep.subr.bf16.mxu1 %v985_v0  ;;  %785 = vmatpush3.bf16.msra.mxu0 %v850_v50 }
  0x56   :  { %790 = vmatprep.subr.bf16.mxu0 %v985_v0 }
  0x5c   :  { %753 = vmatpush3.bf16.xpose.msra.mxu1 %v835_v11  ;;  %v362_v11 = vld [vmem:[#allocation4 + $0x8] sm:$0xff] }
  0x5d   :  { %754 = vmatprep.subr.bf16.mxu1 %v985_v0 }
  0x64   :  { %755 = vmatpush3.bf16.xpose.msra.mxu1 %v836_v12 }
  0x65   :  { %756 = vmatprep.subr.bf16.mxu1 %v985_v0 }
  0x6c   :  { %757 = vmatpush3.bf16.xpose.msra.mxu1 %v837_v13 }
  0x6d   :  { %758 = vmatprep.subr.bf16.mxu1 %v985_v0 }
  0x74   :  { %759 = vmatpush3.bf16.xpose.msra.mxu1 %v838_v14 }
  0x75   :  { %760 = vmatprep.subr.bf16.mxu1 %v985_v0 }
  0x7c   :  { %761 = vmatpush3.bf16.xpose.msra.mxu1 %v839_v15 }
  0x7d   :  { %762 = vmatprep.subr.bf16.mxu1 %v985_v0 }
  0x84   :  { %763 = vmatpush3.bf16.xpose.msra.mxu1 %v840_v16 }
  0x85   :  { %764 = vmatprep.subr.bf16.mxu1 %v985_v0 }
  0x8c   :  { %765 = vmatpush3.bf16.xpose.msra.mxu1 %v841_v17 }
 0x113   :  { %v187_v18 = vpop.f32.mrf.mxu1 }
 0x115   :  { %v748_v19 = vpop.f32.mrf.mxu1 }
 0x117   :  { %v190_v20 = vpop.f32.mrf.mxu1 }
 0x118   :  { %v692_v21 = vpack.c.bf16 %v190_v20, %v187_v18 }
 0x119   :  { %v749_v22 = vpop.f32.mrf.mxu1 }
 0x11a   :  { %693 = vst [vmem:[#allocation2] sm:$0xff] %v692_v21  }
 0x121   :  { %v842_v23 = vld [vmem:[#allocation2] sm:$0xff]  }
 0x122   :  { %767 = vmatmul.mubr.bf16.vlgmr.msra.gmra.mxu1 %v842_v23 }
 0x1e2   :  { %v324_v26 = vpop.f32.mrf.mxu1 }
 0x1e3   :  { %v325_v27 = vadd.f32 %v661_v25, %v324_v26 }
 0x1e4   :  { %v768_v28 = vpop.f32.mrf.mxu1 }
 0x1e5   :  { %333 = vmax.xlane.f32.xlu0 %v325_v27 }
 0x1e6   :  { %v327_v29 = vpop.f32.mrf.mxu1 }
 0x1e7   :  { %v328_v30 = vadd.f32 %v661_v25, %v327_v29 }
 0x1e8   :  { %v769_v31 = vpop.f32.mrf.mxu1 }
 0x1e9   :  { %335 = vmax.xlane.f32.xlu0 %v328_v30 }
 0x26e   :  { %v334_v37 = vpop.xlane.xlu0 %333 }
 0x26f   :  { %v337_v38 = vmax.f32 %v331_v35, %v334_v37 }
 0x271   :  { %v339_v41 = vsub.f32 %v331_v35, %v337_v38  ;;  %498 = vst.msk [vmem:[#allocation3] sm:$0xff] %vm204_vm1, %v337_v38  ;;  %347 = vperm.xlu1 %823, %v337_v38  }
 0x272   :  { %v336_v42 = vpop.xlane.xlu0 %335 }
 0x273   :  { %v341_v43 = vmul.f32 1.442695, %v339_v41  ;;  %v338_v44 = vmax.f32 %v332_v39, %v336_v42 }
 0x275   :  { %859 = vpow2.f32 %v341_v43  ;;  %v340_v46 = vsub.f32 %v332_v39, %v338_v44  ;;  %499 = vst.msk [vmem:[#allocation3 + $0x8] sm:$0xff] %vm204_vm1, %v338_v44  ;;  %352 = vperm.xlu1 %823, %v338_v44  }
 0x277   :  { %v343_v48 = vmul.f32 1.442695, %v340_v46 }
 0x279   :  { %861 = vpow2.f32 %v343_v48 }
 0x282   :  { %v860_v51 = vpop.eup %859 }
 0x283   :  { %378 = vperm.xlu0 %824, %v860_v51   ;;  %v363_v9 = vmul.f32 %v860_v51, %v361_v8 }
 0x286   :  { %v862_v52 = vpop.eup %861 }
 0x287   :  { %383 = vperm.xlu1 %823, %v862_v52   ;;  %v364_v13 = vmul.f32 %v862_v52, %v362_v11 }
 0x2ec   :  { %v348_v53 = vpop.permute.xlu1 %347 }
 0x2ed   :  { %v355_v54 = vsub.f32 %v325_v27, %v348_v53 }
 0x2ef   :  { %v357_v55 = vmul.f32 1.442695, %v355_v54 }
 0x2f0   :  { %v353_v56 = vpop.permute.xlu1 %352 }
 0x2f1   :  { %863 = vpow2.f32 %v357_v55  ;;  %v356_v57 = vsub.f32 %v328_v30, %v353_v56 }
 0x2f3   :  { %v359_v58 = vmul.f32 1.442695, %v356_v57 }
 0x2f5   :  { %865 = vpow2.f32 %v359_v58 }
 0x2fe   :  { %v864_v59 = vpop.eup %863  ;;  %v379_v19 = vpop.permute.xlu0 %378 }
 0x2ff   :  { %365 = vadd.xlane.f32.xlu1 %v864_v59  ;;  %v386_v22 = vmul.f32 0.0, %v379_v19 }
 0x302   :  { %v866_v60 = vpop.eup %865  ;;  %v384_v7 = vpop.permute.xlu1 %383 }
 0x303   :  { %367 = vadd.xlane.f32.xlu1 %v866_v60  ;;  %v388_v61 = vpack.c.bf16 %v866_v60, %v864_v59  ;;  %v387_v23 = vmul.f32 0.0, %v384_v7 }
 0x305   :  { %787 = vmatmul.mubr.bf16.vlgmr.msra.gmra.mxu0 %v388_v61 }
 0x306   :  { %806 = vmatprep.mubr.msk.bf16.mxu0 %vm986_vm0, %v985_v0  ;;  %791 = vmatpush3.bf16.xpose.msra.mxu0 %v851_v62 }
 0x307   :  { %792 = vmatprep.subr.bf16.mxu0 %v985_v0 }
 0x30e   :  { %793 = vmatpush3.bf16.xpose.msra.mxu0 %v852_v63 }
 0x30f   :  { %794 = vmatprep.subr.bf16.mxu0 %v985_v0 }
 0x316   :  { %795 = vmatpush3.bf16.xpose.msra.mxu0 %v853_v1 }
 0x317   :  { %796 = vmatprep.subr.bf16.mxu0 %v985_v0 }
 0x31e   :  { %797 = vmatpush3.bf16.xpose.msra.mxu0 %v854_v2 }
 0x31f   :  { %798 = vmatprep.subr.bf16.mxu0 %v985_v0 }
 0x326   :  { %799 = vmatpush3.bf16.xpose.msra.mxu0 %v855_v3 }
 0x327   :  { %800 = vmatprep.subr.bf16.mxu0 %v985_v0 }
 0x32e   :  { %801 = vmatpush3.bf16.xpose.msra.mxu0 %v856_v4 }
 0x32f   :  { %802 = vmatprep.subr.bf16.mxu0 %v985_v0 }
 0x336   :  { %803 = vmatpush3.bf16.xpose.msra.mxu0 %v857_v5 }
 0x337   :  { %804 = vmatprep.subr.bf16.mxu0 %v985_v0 }
 0x33e   :  { %805 = vmatpush3.bf16.xpose.msra.mxu0 %v858_v6 }
 0x388   :  { %v366_v10 = vpop.xlane.xlu1 %365 }
 0x389   :  { %v369_v12 = vadd.f32 %v366_v10, %v363_v9 }
 0x38b   :  { %372 = vst.msk [vmem:[#allocation4] sm:$0xff] %vm204_vm1, %v369_v12 }
 0x38c   :  { %v368_v14 = vpop.xlane.xlu1 %367 }
 0x38d   :  { %v370_v15 = vadd.f32 %v368_v14, %v364_v13 }
 0x38f   :  { %373 = vst.msk [vmem:[#allocation4 + $0x8] sm:$0xff] %vm204_vm1, %v370_v15 }
 0x392   :  { %v611_v16 = vld [vmem:[#allocation4] sm:$0xff] }
 0x393   :  { %867 = vrcp.f32 %v611_v16 }
 0x396   :  { %v612_v17 = vld [vmem:[#allocation4 + $0x8] sm:$0xff] }
 0x397   :  { %869 = vrcp.f32 %v612_v17 }
 0x3a0   :  { %v868_v0 = vpop.eup %867 }
 0x3a1   :  { %619 = vperm.xlu0 %824, %v868_v0  }
 0x3a4   :  { %v870_v18 = vpop.eup %869 }
 0x3a5   :  { %624 = vperm.xlu1 %823, %v870_v18  }
 0x3c5   :  { %v487_v20 = vpop.f32.mrf.mxu0 }
 0x3c6   :  { %v494_v25 = vadd.f32 %v487_v20, %v386_v22 }
 0x3c7   :  { %v788_v21 = vpop.f32.mrf.mxu0 }
 0x3c9   :  { %v490_v24 = vpop.f32.mrf.mxu0 }
 0x3ca   :  { %v495_v26 = vadd.f32 %v490_v24, %v387_v23 }
 0x3cb   :  { %v789_v27 = vpop.f32.mrf.mxu0 }
 0x3cc   :  { %v505_v28 = vpack.c.bf16 %v495_v26, %v494_v25 }
 0x3ce   :  { %807 = vmatmul.mubr.bf16.vlgmr.msra.gmra.mxu0 %v505_v28 }
 0x41c   :  { %v620_v29 = vpop.permute.xlu0 %619 }
 0x420   :  { %v625_v33 = vpop.permute.xlu1 %624 }
 0x48e   :  { %v604_v30 = vpop.f32.mrf.mxu0 }
 0x48f   :  { %v627_v31 = vmul.f32 %v620_v29, %v604_v30 }
 0x490   :  { %v808_v32 = vpop.f32.mrf.mxu0 }
 0x491   :  { %629 = vst [vmem:[#allocation14] sm:$0xff] %v627_v31 }
 0x492   :  { %v607_v34 = vpop.f32.mrf.mxu0 }
 0x493   :  { %v628_v35 = vmul.f32 %v625_v33, %v607_v34 }
 0x494   :  { %v809_v36 = vpop.f32.mrf.mxu0 }
 0x495   :  { %630 = vst [vmem:[#allocation14 + $0x8] sm:$0xff] %v628_v35 }
 0x496   :  { %962 = shalt.err (!%p959_p10)
}
 0x497   :  { %s990_s15 = smov 128   ;;  %s991_s16 = smov 8  }
 0x498   :  { %642 = dma.vmem_to_hbm [thread:$0]  %s637_s13, 256, %s1107_s5, [#allocation8], %s990_s15, %s990_s15, %s991_s16  }
 0x499   :  { %977 = dma.done.wait [#allocation8], 256  }
 0x49a   :  { %978 = vsyncadd [#allocation8], 4294967040 }
 0x49b   :  { %646 = vsyncpa [#allocation7], 1 }
 0x49c   :  { %647 = vsyncpa [#allocation10], 1 }
 0x49d   :  { %648 = vsyncpa [#allocation13], 1 }
 0x49e   :  { %649 = vsyncpa [#allocation8], 1 }

</bundles_post_ra>
